<compile_context>
chip_gen: v7x
topology: tpu7x:2x2x1
jax: 0.10.0
libtpu: 0.0.40
codegen_flags: <defaults>
</compile_context>

<pallas_src>
import functools

import jax
import jax.numpy as jnp
from jax import lax
from jax.experimental import pallas as pl
from jax.experimental.pallas import tpu as pltpu


def _style_loss_kernel(x_ref, mask_ref, target_ref, out_ref,
                       feats_ref, gram_ref, *, B, C, inv_norm, mse_scale):
    """Grid = (n_masks, HW // tk); the HW (reduction) axis is last.

    x_ref:      (B*C, tk)    bf16 feature tile (shared across masks, varies with k)
    mask_ref:   (1, B, tk)   f32 mask tile for mask m (no channel broadcast in HBM)
    target_ref: (1, BC, BC)  f32 target gram for mask m
    out_ref:    (1, 1)       f32 accumulated weighted loss (resident across grid)
    feats_ref:  (BC, tk)     bf16 scratch: masked features for this tile
    gram_ref:   (BC, BC)     f32 scratch: gram accumulator over the HW tiles
    """
    m = pl.program_id(0)
    k = pl.program_id(1)

    @pl.when(jnp.logical_and(m == 0, k == 0))
    def _():
        out_ref[...] = jnp.zeros_like(out_ref)

    @pl.when(k == 0)
    def _():
        gram_ref[...] = jnp.zeros_like(gram_ref)

    # Broadcast the (B, tk) mask over the C channels while applying it, using
    # static row slices (B is small). f32 multiply on the VPU, bf16 feed to MXU.
    for b in range(B):  # static Python loop
        xb = x_ref[b * C:(b + 1) * C, :].astype(jnp.float32)      # (C, tk)
        mb = mask_ref[0, b:b + 1, :].astype(jnp.float32)          # (1, tk)
        feats_ref[b * C:(b + 1) * C, :] = (xb * mb).astype(jnp.bfloat16)

    feats = feats_ref[...]
    # Partial gram: contract the HW (lane) dim directly, no transpose materialized.
    gram_ref[...] += lax.dot_general(
        feats, feats,
        dimension_numbers=(((1,), (1,)), ((), ())),
        preferred_element_type=jnp.float32,
    )

    @pl.when(k == pl.num_programs(1) - 1)
    def _():
        diff = gram_ref[...] * inv_norm - target_ref[0]
        # mse_scale = weight / (BC*BC)  (F.mse_loss mean reduction + module weight)
        out_ref[...] += jnp.sum(diff * diff) * mse_scale


def _gram_matrix_ref(x):
    """Plain-JAX gram_matrix (used for __init__-time target setup + reference)."""
    B, C, H, W = x.shape
    feats = x.reshape(B * C, H * W)
    return (feats @ feats.T) / (B * C * H * W)


def augmented_style_loss_forward(x, input_masks, targets, weight=1.0, tk=None):
    """Returns (input, loss) — PyTorch forward returns `input` and stores loss."""
    B, C, H, W = x.shape
    BC, HW = B * C, H * W
    n_masks = len(input_masks)

    # Pick an HW tile: largest multiple of 128 (<= 2048) dividing HW, else full HW.
    if tk is None:
        tk = HW
        for cand in (2048, 1024, 512, 256, 128):
            if HW % cand == 0:
                tk = cand
                break
    assert HW % tk == 0 and (tk % 128 == 0 or tk == HW)
    nk = HW // tk

    # bf16 feature feed (halves x HBM bytes); masks stay un-broadcast over C and
    # f32 so soft (non-binary) masks keep full precision; targets stay f32.
    feats = x.reshape(BC, HW).astype(jnp.bfloat16)
    masks = jnp.stack(input_masks).reshape(n_masks, B, HW).astype(jnp.float32)
    tgts = jnp.stack(targets).astype(jnp.float32)            # (n_masks, BC, BC)

    kernel = functools.partial(
        _style_loss_kernel,
        B=B, C=C,
        inv_norm=1.0 / (B * C * H * W),
        mse_scale=float(weight) / (BC * BC),
    )

    loss_sum = pl.pallas_call(
        kernel,
        out_shape=jax.ShapeDtypeStruct((1, 1), jnp.float32),
        grid_spec=pltpu.PrefetchScalarGridSpec(
            num_scalar_prefetch=0,
            grid=(n_masks, nk),                              # reduction axis last
            in_specs=[
                pl.BlockSpec((BC, tk), lambda m, k: (0, k)),
                pl.BlockSpec((1, B, tk), lambda m, k: (m, 0, k)),
                pl.BlockSpec((1, BC, BC), lambda m, k: (m, 0, 0)),
            ],
            out_specs=pl.BlockSpec((1, 1), lambda m, k: (0, 0)),
            scratch_shapes=[
                pltpu.VMEM((BC, tk), jnp.bfloat16),          # masked feats tile
                pltpu.VMEM((BC, BC), jnp.float32),           # gram accumulator
            ],
        ),
        compiler_params=pltpu.CompilerParams(
            # Output / gram accumulators are revisited across both axes.
            dimension_semantics=("arbitrary", "arbitrary"),
        ),
    )(feats, masks, tgts)

    loss = loss_sum[0, 0]
    return x, loss


if __name__ == "__main__":
    key = jax.random.PRNGKey(0)
    B, C, H, W = 2, 4, 16, 16
    n_masks = 2
    weight = 1.0

    k1, k2, k3, k4 = jax.random.split(key, 4)
    # Deterministic synthetic "parameters" (module __init__ state):
    target_feature = jax.random.normal(k1, (B, C, H, W), dtype=jnp.float32)
    target_masks = [
        (jax.random.uniform(k, (B, 1, H, W)) > 0.5).astype(jnp.float32)
        for k in jax.random.split(k2, n_masks)
    ]
    input_masks = [
        (jax.random.uniform(k, (B, 1, H, W)) > 0.5).astype(jnp.float32)
        for k in jax.random.split(k3, n_masks)
    ]
    # targets = gram_matrix(target_feature * mask) (init-time setup, plain JAX).
    targets = [_gram_matrix_ref(target_feature * m) for m in target_masks]

    x = jax.random.normal(k4, (B, C, H, W), dtype=jnp.float32)

    # tk=128 -> 2 reduction steps over HW=256, exercising the gram accumulator path.
    out, loss = augmented_style_loss_forward(x, input_masks, targets,
                                             weight=weight, tk=128)
    out = jax.block_until_ready(out)
    loss = jax.block_until_ready(loss)

    # Reference check against plain-JAX (f32) semantics of the PyTorch module.
    ref_loss = weight * sum(
        jnp.mean((_gram_matrix_ref(x * m) - t) ** 2)
        for m, t in zip(input_masks, targets)
    )
    assert jnp.allclose(out, x), "forward must return input unchanged"
    # bf16 MXU inputs => ~1% relative deviation from the f32 reference.
    assert jnp.allclose(loss, ref_loss, rtol=5e-2, atol=1e-6), (loss, ref_loss)

    print("KERNEL_OK")
</pallas_src>

<mosaic_0001>
module attributes {stable_mosaic.version = 11 : i64} {
  func.func @_style_loss_kernel(%arg0: i32, %arg1: i32, %arg2: memref<8x128xbf16, #tpu.memory_space<vmem>>, %arg3: memref<1x2x128xf32, #tpu.memory_space<vmem>>, %arg4: memref<1x8x8xf32, #tpu.memory_space<vmem>>, %arg5: memref<1x1xf32, #tpu.memory_space<vmem>>, %arg6: memref<8x128xbf16, #tpu.memory_space<vmem>>, %arg7: memref<8x8xf32, #tpu.memory_space<vmem>>) attributes {dimension_semantics = [#tpu.dimension_semantics<arbitrary>, #tpu.dimension_semantics<arbitrary>], iteration_bounds = array<i64: 2, 2>, scalar_prefetch = 0 : i64, scratch_operands = 2 : i64, tpu.core_type = #tpu.core_type<tc>, window_params = [{transform_indices = @transform_0, window_bounds = array<i64: 8, 128>}, {transform_indices = @transform_1, window_bounds = array<i64: 1, 2, 128>}, {transform_indices = @transform_2, window_bounds = array<i64: 1, 8, 8>}, {pipeline_mode = #tpu.pipeline_mode<synchronous>, transform_indices = @transform_3, window_bounds = array<i64: 1, 1>}]} {
    %c0_i32 = arith.constant 0 : i32
    %0 = arith.cmpi eq, %arg0, %c0_i32 : i32
    %c0_i32_0 = arith.constant 0 : i32
    %1 = arith.cmpi eq, %arg1, %c0_i32_0 : i32
    %2 = arith.andi %0, %1 : i1
    %3 = arith.extui %2 : i1 to i32
    %c0_i32_1 = arith.constant 0 : i32
    %4 = arith.cmpi ne, %3, %c0_i32_1 : i32
    scf.if %4 {
      %cst_22 = arith.constant 0.000000e+00 : f32
      %32 = vector.broadcast %cst_22 : f32 to vector<1x1xf32>
      %c0_23 = arith.constant 0 : index
      %c0_24 = arith.constant 0 : index
      %33 = vector.load %arg5[%c0_23, %c0_24] : memref<1x1xf32, #tpu.memory_space<vmem>>, vector<1x1xf32>
      tpu.vector_store %arg5[%c0_23, %c0_24], %32 {strides = array<i32>} : memref<1x1xf32, #tpu.memory_space<vmem>>, vector<1x1xf32>,
    } else {
    }
    %c0_i32_2 = arith.constant 0 : i32
    %5 = arith.cmpi eq, %arg1, %c0_i32_2 : i32
    %6 = arith.extui %5 : i1 to i32
    %c0_i32_3 = arith.constant 0 : i32
    %7 = arith.cmpi ne, %6, %c0_i32_3 : i32
    scf.if %7 {
      %cst_22 = arith.constant 0.000000e+00 : f32
      %32 = vector.broadcast %cst_22 : f32 to vector<8x8xf32>
      %c0_23 = arith.constant 0 : index
      %c0_24 = arith.constant 0 : index
      %33 = vector.load %arg7[%c0_23, %c0_24] : memref<8x8xf32, #tpu.memory_space<vmem>>, vector<8x8xf32>
      tpu.vector_store %arg7[%c0_23, %c0_24], %32 {strides = array<i32>} : memref<8x8xf32, #tpu.memory_space<vmem>>, vector<8x8xf32>,
    } else {
    }
    %c0 = arith.constant 0 : index
    %c0_4 = arith.constant 0 : index
    %8 = vector.load %arg2[%c0, %c0_4] : memref<8x128xbf16, #tpu.memory_space<vmem>>, vector<4x128xbf16>
    %9 = arith.extf %8 : vector<4x128xbf16> to vector<4x128xf32>
    %c0_5 = arith.constant 0 : index
    %c0_6 = arith.constant 0 : index
    %c0_7 = arith.constant 0 : index
    %10 = vector.load %arg3[%c0_5, %c0_6, %c0_7] : memref<1x2x128xf32, #tpu.memory_space<vmem>>, vector<1x1x128xf32>
    %11 = vector.shape_cast %10 : vector<1x1x128xf32> to vector<1x128xf32>
    %12 = vector.broadcast %11 : vector<1x128xf32> to vector<4x128xf32>
    %13 = arith.mulf %9, %12 : vector<4x128xf32>
    %14 = arith.truncf %13 : vector<4x128xf32> to vector<4x128xbf16>
    %c0_8 = arith.constant 0 : index
    %c0_9 = arith.constant 0 : index
    %15 = vector.load %arg6[%c0_8, %c0_9] : memref<8x128xbf16, #tpu.memory_space<vmem>>, vector<4x128xbf16>
    tpu.vector_store %arg6[%c0_8, %c0_9], %14 {strides = array<i32>} : memref<8x128xbf16, #tpu.memory_space<vmem>>, vector<4x128xbf16>,
    %c4 = arith.constant 4 : index
    %c0_10 = arith.constant 0 : index
    %16 = vector.load %arg2[%c4, %c0_10] : memref<8x128xbf16, #tpu.memory_space<vmem>>, vector<4x128xbf16>
    %17 = arith.extf %16 : vector<4x128xbf16> to vector<4x128xf32>
    %c0_11 = arith.constant 0 : index
    %c1 = arith.constant 1 : index
    %c0_12 = arith.constant 0 : index
    %18 = vector.load %arg3[%c0_11, %c1, %c0_12] : memref<1x2x128xf32, #tpu.memory_space<vmem>>, vector<1x1x128xf32>
    %19 = vector.shape_cast %18 : vector<1x1x128xf32> to vector<1x128xf32>
    %20 = vector.broadcast %19 : vector<1x128xf32> to vector<4x128xf32>
    %21 = arith.mulf %17, %20 : vector<4x128xf32>
    %22 = arith.truncf %21 : vector<4x128xf32> to vector<4x128xbf16>
    %c4_13 = arith.constant 4 : index
    %c0_14 = arith.constant 0 : index
    %23 = vector.load %arg6[%c4_13, %c0_14] : memref<8x128xbf16, #tpu.memory_space<vmem>>, vector<4x128xbf16>
    tpu.vector_store %arg6[%c4_13, %c0_14], %22 {strides = array<i32>} : memref<8x128xbf16, #tpu.memory_space<vmem>>, vector<4x128xbf16>,
    %c0_15 = arith.constant 0 : index
    %c0_16 = arith.constant 0 : index
    %24 = vector.load %arg6[%c0_15, %c0_16] : memref<8x128xbf16, #tpu.memory_space<vmem>>, vector<8x128xbf16>
    %c0_17 = arith.constant 0 : index
    %c0_18 = arith.constant 0 : index
    %25 = vector.load %arg7[%c0_17, %c0_18] : memref<8x8xf32, #tpu.memory_space<vmem>>, vector<8x8xf32>
    %cst = arith.constant dense<0.000000e+00> : vector<8x8xf32>
    %26 = tpu.matmul %24, %24, %cst {dimension_numbers = #tpu.dot_dimension_numbers<[1], [1], [0], [0], [0, 0, 1, 0], [], []>} : vector<8x128xbf16>, vector<8x128xbf16>, vector<8x8xf32> -> vector<8x8xf32>
    %27 = arith.addf %25, %26 : vector<8x8xf32>
    %c0_19 = arith.constant 0 : index
    %c0_20 = arith.constant 0 : index
    %28 = vector.load %arg7[%c0_19, %c0_20] : memref<8x8xf32, #tpu.memory_space<vmem>>, vector<8x8xf32>
    tpu.vector_store %arg7[%c0_19, %c0_20], %27 {strides = array<i32>} : memref<8x8xf32, #tpu.memory_space<vmem>>, vector<8x8xf32>,
    %c1_i32 = arith.constant 1 : i32
    %29 = arith.cmpi eq, %arg1, %c1_i32 : i32
    %30 = arith.extui %29 : i1 to i32
    %c0_i32_21 = arith.constant 0 : i32
    %31 = arith.cmpi ne, %30, %c0_i32_21 : i32
    scf.if %31 {
      %c0_22 = arith.constant 0 : index
      %c0_23 = arith.constant 0 : index
      %32 = vector.load %arg7[%c0_22, %c0_23] : memref<8x8xf32, #tpu.memory_space<vmem>>, vector<8x8xf32>
      %cst_24 = arith.constant 4.8828125E-4 : f32
      %33 = vector.broadcast %cst_24 : f32 to vector<8x8xf32>
      %34 = arith.mulf %32, %33 : vector<8x8xf32>
      %c0_25 = arith.constant 0 : index
      %c0_26 = arith.constant 0 : index
      %c0_27 = arith.constant 0 : index
      %35 = vector.load %arg4[%c0_25, %c0_26, %c0_27] : memref<1x8x8xf32, #tpu.memory_space<vmem>>, vector<1x8x8xf32>
      %36 = vector.shape_cast %35 : vector<1x8x8xf32> to vector<8x8xf32>
      %37 = arith.subf %34, %36 : vector<8x8xf32>
      %c0_28 = arith.constant 0 : index
      %c0_29 = arith.constant 0 : index
      %38 = vector.load %arg5[%c0_28, %c0_29] : memref<1x1xf32, #tpu.memory_space<vmem>>, vector<1x1xf32>
      %39 = arith.mulf %37, %37 : vector<8x8xf32>
      %40 = vector.shape_cast %39 : vector<8x8xf32> to vector<1x8x8xf32>
      %cst_30 = arith.constant dense<0.000000e+00> : vector<1xf32>
      %41 = vector.multi_reduction <add>, %40, %cst_30 [1, 2] : vector<1x8x8xf32> to vector<1xf32>
      %42 = vector.shape_cast %41 : vector<1xf32> to vector<1x1x1xf32>
      %43 = vector.extract %42[0, 0, 0] : f32 from vector<1x1x1xf32>
      %cst_31 = arith.constant 1.562500e-02 : f32
      %44 = arith.mulf %43, %cst_31 : f32
      %45 = vector.broadcast %44 : f32 to vector<1x1xf32>
      %46 = arith.addf %38, %45 : vector<1x1xf32>
      %c0_32 = arith.constant 0 : index
      %c0_33 = arith.constant 0 : index
      %47 = vector.load %arg5[%c0_32, %c0_33] : memref<1x1xf32, #tpu.memory_space<vmem>>, vector<1x1xf32>
      tpu.vector_store %arg5[%c0_32, %c0_33], %46 {strides = array<i32>} : memref<1x1xf32, #tpu.memory_space<vmem>>, vector<1x1xf32>,
    } else {
    }
    return
  }
  func.func @transform_0(%arg0: i32, %arg1: i32) -> (i32, i32) {
    %c0_i32 = arith.constant 0 : i32
    %c0_i32_0 = arith.constant 0 : i32
    return %c0_i32, %arg1 : i32, i32
  }
  func.func @transform_1(%arg0: i32, %arg1: i32) -> (i32, i32, i32) {
    %c0_i32 = arith.constant 0 : i32
    %c0_i32_0 = arith.constant 0 : i32
    return %arg0, %c0_i32, %arg1 : i32, i32, i32
  }
  func.func @transform_2(%arg0: i32, %arg1: i32) -> (i32, i32, i32) {
    %c0_i32 = arith.constant 0 : i32
    %c0_i32_0 = arith.constant 0 : i32
    %c0_i32_1 = arith.constant 0 : i32
    return %arg0, %c0_i32, %c0_i32_0 : i32, i32, i32
  }
  func.func @transform_3(%arg0: i32, %arg1: i32) -> (i32, i32) {
    %c0_i32 = arith.constant 0 : i32
    %c0_i32_0 = arith.constant 0 : i32
    %c0_i32_1 = arith.constant 0 : i32
    return %c0_i32, %c0_i32_0 : i32, i32
  }
}

</mosaic_0001>

<bundles_post_ra>
// kernel: tpu_custom_call.1
= control target key start
LH: loop header
LB: loop body
LE: loop exit
PB: predicated region body
PF: predicated region fallthrough
CT: control target
= control target key end

     0   :  { %s1311_s0 = inlined_call_operand.hbm [shape: bf16[8,256], index: 0, kind: input, shape index: {}]   ;;  %s1312_s1 = inlined_call_operand.hbm [shape: f32[2,2,256], index: 1, kind: input, shape index: {}]   ;;  %s1313_s2 = inlined_call_operand.hbm [shape: f32[2,8,8], index: 2, kind: input, shape index: {}]   ;;  %s1314_s3 = inlined_call_operand.hbm [shape: f32[1,1], index: 3, kind: output, shape index: {}]  }
   0x1   :  { %1327 = sst [smem:[#allocation21_spill]] %s1312_s1 }
   0x2   :  { %1328 = sst [smem:[#allocation22_spill]] %s1314_s3 }
   0x3   :  { %8 = vsyncpa [#allocation5], 0 }
   0x4   :  { %10 = vsyncpa [#allocation5 + $0x1], 0 }
   0x5   :  { %11 = vsyncpa [#allocation8], 0 }
   0x6   :  { %13 = vsyncpa [#allocation8 + $0x1], 0 }
   0x7   :  { %14 = vsyncpa [#allocation6], 0  ;;  %s923_s12 = smov 0   ;;  %s925_s13 = smov 0  }
   0x8   :  { %s927_s14 = smov 0   ;;  %s929_s15 = smov 0  }
   0x9   :  { %s931_s16 = smov 0   ;;  %s933_s17 = smov 0  }
   0xa   :  { %s935_s18 = smov 0   ;;  %s937_s19 = smov 0  }
   0xb   :  { %s939_s20 = smov 0   ;;  %s941_s21 = smov 0  }
   0xc   :  { %s943_s22 = smov 0   ;;  %s945_s23 = smov 0  }
   0xd   :  { %s947_s24 = smov 0   ;;  %s949_s25 = smov 0  }
   0xe LB: > { %1329 = sst [smem:[#allocation15_spill]] %s857_s16  ;;  %s992_s26 = sadd.s32 4294967295, %s893_s25   ;;  %s893_s25 = sphi %s949_s25, %s20_s25   ;;  %s889_s24 = sphi %s947_s24, %s1380_s24   ;;  %s885_s23 = sphi %s945_s23, %s1379_s23   ;;  %s881_s22 = sphi %s943_s22, %s1378_s22   ;;  %s877_s21 = sphi %s941_s21, %s1377_s21   ;;  %s873_s20 = sphi %s939_s20, %s1376_s20   ;;  %s869_s19 = sphi %s937_s19, %s1375_s19   ;;  %s865_s18 = sphi %s935_s18, %s1374_s18   ;;  %s861_s17 = sphi %s933_s17, %s1373_s17   ;;  %s857_s16 = sphi %s931_s16, %s1372_s16   ;;  %s853_s15 = sphi %s929_s15, %s1366_s15   ;;  %s849_s14 = sphi %s927_s14, %s1371_s14   ;;  %s845_s13 = sphi %s925_s13, %s1370_s13   ;;  %s841_s12 = sphi %s923_s12, %s1369_s12  }
   0xf   : > { %1330 = sst [smem:[#allocation16_spill]] %s877_s21  ;;  %s29_s27 = sadd.s32 1, %s885_s23 }
  0x10   : > { %1331 = sst [smem:[#allocation17_spill]] %s881_s22  ;;  %p30_p0 = scmp.ge.s32.totalorder %s29_s27, 2 }
  0x11   : > { %s32_s28 = sadd.s32 1, %s889_s24  ;;  %p1323_p1 = scmp.eq.s32.totalorder %s893_s25, 0 }
  0x12   : > { %p1322_p2 = scmp.eq.s32.totalorder %s992_s26, 0  ;;  %s1382_s27 = smov (%p30_p0, %s29_s27), 0 }
  0x13   : > { %1332 = sst [smem:[#allocation18_spill]] %s1382_s27  ;;  %s1384_s28 = smov (!%p30_p0, %s32_s28), %s889_s24 }
  0x14   : > { %s1003_s29 = ssub.s32 %s885_s23, %s1382_s27  ;;  %s67_s30 = sadd.s32 1, %s861_s17 }
  0x15   : > { %p34_p3 = scmp.ge.s32.totalorder %s1384_s28, 2  ;;  %p74_p5 = scmp.ne.s32.totalorder %s861_s17, %s857_s16 }
  0x16   : > { %p80_p6 = scmp.ne.s32.totalorder %s857_s16, %s853_s15  ;;  %p1321_p11 = scmp.lt.s32.totalorder %s893_s25, 4 }
  0x17   : > { %s1386_s28 = smov (%p34_p3, %s1384_s28), 0  ;;  %p1014_p7 = por %p74_p5, %p1323_p1 }
  0x18   : > { %1333 = sst [smem:[#allocation19_spill]] %s1386_s28  ;;  %p1020_p8 = por %p80_p6, %p1322_p2 }
  0x19   : > { %s1026_s6 = ssub.s32 %s889_s24, %s1386_s28  ;;  %s169_s8 = sand.u32 1, %s893_s25  }
  0x1a   : > { %s1335_s5 = scalar_select %p1020_p8, 1, 0 }
  0x1b   : > { %s64_s7 = sor.u32 %s1026_s6, %s1003_s29  ;;  %s171_s9 = sand.u32 1, %s861_s17  }
  0x1c   : > { %1336 = sst [smem:[#allocation20_spill]] %s1335_s5  ;;  %p65_p10 = scmp.eq.s32.totalorder %s64_s7, 0 }
  0x1d   : > { %s484_s11 = sshll.u32 %s171_s9, 1  ;;  %s485_s15 = sshll.u32 %s889_s24, 1 }
  0x1e   : > { %s1035_s10 = scalar_select %p65_p10, %s861_s17, %s67_s30  }
  0x1f   : > { %s178_s27 = sadd.s32 %s885_s23, %s485_s15  ;;  %s173_s3 = scalar_lea.vmem [#allocation7], %s484_s11 }
  0x20   : > { %s182_s28 = sshll.u32 %s173_s3, 4  ;;  %s486_s21 = sshll.u32 %s178_s27, 5  ;;  %s1039_s28 = int_to_ptr.vmem [resolvable:$true] %s182_s28 }
  0x21   : > { %s1337_s1 = sld [smem:[#allocation21_spill]]  ;;  %p1050_p12 = pnand %p1321_p11, %p1014_p7 }
  0x22   : > { %s1056_s3 = scalar_lea.sflag [#allocation8], %s169_s8 }
  0x23   : > { %p653_p5 = pneg %p1050_p12 }
  0x27   : > { %s1044_s16 = scalar_lea.hbm %s1337_s1, %s486_s21  ;;  %s656_s4 = scalar_lea.hbm %s1337_s1, 128 }
  0x28   : > { %s651_s27 = scalar_lea.hbm %s1044_s16, 32  ;;  %p657_p7 = scmp.lt.u32.totalorder %s1044_s16, %s1337_s1 }
  0x29   : > { %p652_p3 = scmp.ne.s32.totalorder %s1044_s16, %s651_s27  ;;  %p658_p9 = scmp.lt.u32.totalorder %s656_s4, %s651_s27 }
  0x2a   : > { %p660_p2 = scmp.lt.u32.totalorder %s651_s27, %s1044_s16 }
  0x2b   : > { %p654_p6 = pnand %p653_p5, %p652_p3  ;;  %p659_p11 = por %p658_p9, %p657_p7 }
  0x2d   : > { %p655_p10 = pneg %p654_p6  ;;  %p661_p1 = por %p660_p2, %p659_p11 }
  0x2f   : > { %p662_p4 = pnand %p661_p1, %p655_p10 }
  0x31   : > { %665 = shalt.err (!%p662_p4)
}
  0x32   : > { %s666_s8 = scalar_lea.vmem %s1039_s28, 32  ;;  %s895_s9 = smov [#allocation7]  }
  0x33   : > { %p667_p3 = scmp.ne.s32.totalorder %s1039_s28, %s666_s8  ;;  %s671_s11 = sshll.u32 %s895_s9, 4  ;;  %s672_s11 = int_to_ptr.vmem [resolvable:$false] %s671_s11 }
  0x34   : > { %s673_s15 = scalar_lea.vmem %s672_s11, 64  ;;  %p674_p0 = scmp.lt.s32.totalorder %s1039_s28, %s672_s11 }
  0x35   : > { %p669_p6 = pnand %p667_p3, %p653_p5  ;;  %p675_p9 = scmp.lt.s32.totalorder %s673_s15, %s666_s8 }
  0x37   : > { %p670_p13 = pneg %p669_p6  ;;  %p676_p7 = por %p675_p9, %p674_p0 }
  0x39   : > { %p677_p2 = pnand %p676_p7, %p670_p13 }
  0x3b   : > { %680 = shalt.err (!%p677_p2)
}
  0x3c   : > { %527 = dma.hbm_to_vmem [thread:$0]  (!%p1050_p12), %s1044_s16, 32, %s1039_s28, %s1056_s3  }
  0x3d   : > { %p1339_p1 = scmp.lt.s32.totalorder %s893_s25, 5  ;;  %p1340_p4 = scmp.ge.s32.totalorder %s893_s25, 1 }
  0x3e   : > { %s39_s27 = sadd.s32 1, %s873_s20  ;;  %p46_p13 = scmp.ne.s32.totalorder %s873_s20, %s869_s19 }
  0x3f   : > { %p1088_p11 = pnand %p1340_p4, %p1339_p1  ;;  %p1342_p0 = scmp.eq.s32.totalorder %s1003_s29, 0 }
  0x40   : > { %p1343_p5 = scmp.eq.s32.totalorder %s893_s25, 0  ;;  %p52_p3 = scmp.ne.s32.totalorder %s869_s19, %s865_s18 }
  0x41   : > { %s1341_s30 = scalar_select %p1088_p11, 1, 0 }
  0x42   : > { %s1098_s21 = scalar_select %p1342_p0, %s873_s20, %s39_s27  }
  0x43   : > { %p48_p10 = por %p1343_p5, %p46_p13  ;;  %s151_s22 = sand.u32 1, %s873_s20  }
  0x44   : > { %s483_s4 = sshll.u32 %s885_s23, 6  ;;  %p1344_p6 = scmp.eq.s32.totalorder %s992_s26, 0 }
  0x45   : > { %s482_s16 = sshll.u32 %s151_s22, 2  ;;  %s1115_s8 = scalar_lea.hbm %s1311_s0, %s483_s4 }
  0x46   : > { %p1108_p9 = por %p1344_p6, %p52_p3  ;;  %p1346_p12 = scmp.lt.s32.totalorder %s893_s25, 4 }
  0x47   : > { %s155_s29 = scalar_lea.vmem [#allocation4], %s482_s16  ;;  %s152_s11 = scalar_lea.sflag [#allocation5], %s151_s22 }
  0x48   : > { %s1345_s5 = scalar_select %p1108_p9, 1, 0 }
  0x49   : > { %p1119_p7 = pnand %p1346_p12, %p48_p10  ;;  %s162_s9 = sshll.u32 %s155_s29, 4  ;;  %s1123_s9 = int_to_ptr.vmem [resolvable:$true] %s162_s9 }
  0x4a   : > { %s681_s15 = scalar_lea.hbm %s1115_s8, 64  ;;  %s686_s28 = scalar_lea.hbm %s1311_s0, 128 }
  0x4b   : > { %p682_p2 = scmp.ne.s32.totalorder %s1115_s8, %s681_s15  ;;  %p683_p1 = pneg %p1119_p7 }
  0x4c   : > { %p687_p0 = scmp.lt.u32.totalorder %s1115_s8, %s1311_s0  ;;  %p688_p5 = scmp.lt.u32.totalorder %s686_s28, %s681_s15 }
  0x4d   : > { %p684_p4 = pnand %p683_p1, %p682_p2  ;;  %p690_p3 = scmp.lt.u32.totalorder %s681_s15, %s1115_s8 }
  0x4e   : > { %p689_p10 = por %p688_p5, %p687_p0 }
  0x4f   : > { %p685_p13 = pneg %p684_p4 }
  0x50   : > { %p691_p6 = por %p690_p3, %p689_p10 }
  0x52   : > { %p692_p12 = pnand %p691_p6, %p685_p13 }
  0x54   : > { %695 = shalt.err (!%p692_p12)
}
  0x55   : > { %s696_s22 = scalar_lea.vmem %s1123_s9, 64  ;;  %s896_s16 = smov [#allocation4]  }
  0x56   : > { %p697_p2 = scmp.ne.s32.totalorder %s1123_s9, %s696_s22  ;;  %s701_s29 = sshll.u32 %s896_s16, 4  ;;  %s702_s29 = int_to_ptr.vmem [resolvable:$false] %s701_s29 }
  0x57   : > { %s703_s1 = scalar_lea.vmem %s702_s29, 128  ;;  %p704_p9 = scmp.lt.s32.totalorder %s1123_s9, %s702_s29 }
  0x58   : > { %p699_p4 = pnand %p697_p2, %p683_p1  ;;  %p705_p0 = scmp.lt.s32.totalorder %s703_s1, %s696_s22 }
  0x5a   : > { %p700_p8 = pneg %p699_p4  ;;  %p706_p5 = por %p705_p0, %p704_p9 }
  0x5c   : > { %p707_p10 = pnand %p706_p5, %p700_p8 }
  0x5e   : > { %710 = shalt.err (!%p707_p10)
}
  0x5f   : > { %524 = dma.hbm_to_vmem [thread:$0]  (!%p1119_p7), %s1115_s8, 64, %s1123_s9, %s152_s11  }
  0x60   : > { %s93_s15 = sadd.s32 1, %s849_s14  ;;  %p1348_p8 = scmp.eq.s32.totalorder %s1026_s6, 0 }
  0x61   : > { %p100_p9 = scmp.ne.s32.totalorder %s849_s14, %s845_s13  ;;  %p106_p1 = scmp.ne.s32.totalorder %s845_s13, %s841_s12 }
  0x62   : > { %s1154_s27 = scalar_select %p1348_p8, %s849_s14, %s93_s15  }
  0x63   : > { %s191_s18 = sand.u32 1, %s849_s14   ;;  %s488_s4 = sshll.u32 %s889_s24, 7 }
  0x64   : > { %p1349_p13 = scmp.eq.s32.totalorder %s893_s25, 0  ;;  %p1350_p6 = scmp.eq.s32.totalorder %s992_s26, 0 }
  0x65   : > { %s487_s7 = sshll.u32 %s191_s18, 3  ;;  %s1173_s8 = scalar_lea.hbm %s1313_s2, %s488_s4 }
  0x66   : > { %p102_p3 = por %p100_p9, %p1349_p13  ;;  %p1166_p12 = por %p106_p1, %p1350_p6 }
  0x67   : > { %p1352_p7 = scmp.lt.s32.totalorder %s893_s25, 4  ;;  %s193_s6 = scalar_lea.vmem [#allocation9], %s487_s7 }
  0x68   : > { %s1351_s28 = scalar_select %p1166_p12, 1, 0 }
  0x69   : > { %p1177_p2 = pnand %p1352_p7, %p102_p3  ;;  %s200_s9 = sshll.u32 %s193_s6, 4  ;;  %s201_s9 = int_to_ptr.vmem [resolvable:$true] %s200_s9 }
  0x6a   : > { %s711_s11 = scalar_lea.hbm %s1173_s8, 128  ;;  %s716_s15 = scalar_lea.hbm %s1313_s2, 256 }
  0x6b   : > { %p712_p4 = scmp.ne.s32.totalorder %s1173_s8, %s711_s11  ;;  %p713_p0 = pneg %p1177_p2 }
  0x6c   : > { %p717_p8 = scmp.lt.u32.totalorder %s1173_s8, %s1313_s2  ;;  %p718_p9 = scmp.lt.u32.totalorder %s716_s15, %s711_s11 }
  0x6d   : > { %p714_p5 = pnand %p713_p0, %p712_p4  ;;  %p720_p13 = scmp.lt.u32.totalorder %s711_s11, %s1173_s8 }
  0x6e   : > { %p719_p1 = por %p718_p9, %p717_p8 }
  0x6f   : > { %p715_p10 = pneg %p714_p5 }
  0x70   : > { %p721_p3 = por %p720_p13, %p719_p1 }
  0x72   : > { %p722_p6 = pnand %p721_p3, %p715_p10 }
  0x74   : > { %725 = shalt.err (!%p722_p6)
}
  0x75   : > { %s726_s7 = scalar_lea.vmem %s201_s9, 128  ;;  %s897_s22 = smov [#allocation9]  }
  0x76   : > { %p727_p7 = scmp.ne.s32.totalorder %s201_s9, %s726_s7  ;;  %s731_s16 = sshll.u32 %s897_s22, 4  ;;  %s732_s16 = int_to_ptr.vmem [resolvable:$false] %s731_s16 }
  0x77   : > { %s733_s6 = scalar_lea.vmem %s732_s16, 256  ;;  %p734_p12 = scmp.lt.s32.totalorder %s201_s9, %s732_s16 }
  0x78   : > { %p729_p4 = pnand %p727_p7, %p713_p0  ;;  %p735_p11 = scmp.lt.s32.totalorder %s733_s6, %s726_s7 }
  0x7a   : > { %p730_p5 = pneg %p729_p4  ;;  %p736_p8 = por %p735_p11, %p734_p12 }
  0x7c   : > { %p737_p9 = pnand %p736_p8, %p730_p5 }
  0x7e   : > { %740 = shalt.err (!%p737_p9)
}
  0x7f   : > { %530 = dma.hbm_to_vmem [thread:$0]  (!%p1177_p2), %s1173_s8, 128, %s201_s9, %s1056_s3  }
  0x80   : > { %p1354_p10 = scmp.ne.s32.totalorder %s1341_s30, 0 }
  0x81   : > { %s211_s11 = sand.u32 (!%p1354_p10), 1, %s869_s19   ;;  %p1355_p0 = scmp.ne.s32.totalorder (!%p1354_p10), %s1345_s5, 0 }
  0x82   : > { %209 = sbr.rel (%p1354_p10) target bundleno = 677 (0x2a5), region = 32  ;;  %s1206_s29 = sshll.u32 (!%p1354_p10), %s211_s11, 2 }
  0x83   : > { %s212_s1 = scalar_lea.sflag (!%p1354_p10), [#allocation5], %s211_s11  ;;  %s215_s15 = scalar_lea.vmem (!%p1354_p10), [#allocation4], %s1206_s29 }
  0x89   : > { %824 = dma.done.wait (%p1355_p0), %s212_s1, 64  }
  0x8a   : > { %826 = vsyncadd (%p1355_p0), %s212_s1, 4294967232  ;;  %s1356_s12 = sld [smem:[#allocation15_spill]]  ;;  %s1357_s18 = sld [smem:[#allocation20_spill]] }
  0x8b   : > { %s220_s3 = sand.u32 1, %s992_s26  }
  0x8c   : > { %s221_s9 = scalar_lea.sflag [#allocation8], %s220_s3 }
  0x90   : > { %s222_s8 = sand.u32 1, %s1356_s12   ;;  %p1358_p11 = scmp.ne.s32.totalorder %s1357_s18, 0 }
  0x91   : > { %s1215_s30 = sshll.u32 %s222_s8, 1 }
  0x92   : > { %s224_s4 = scalar_lea.vmem [#allocation7], %s1215_s30 }
  0x93   : > { %828 = dma.done.wait (%p1358_p11), %s221_s9, 32  }
  0x94   : > { %830 = vsyncadd (%p1358_p11), %s221_s9, 4294967264  ;;  %s231_s7 = sand.u32 1, %s845_s13   ;;  %p1359_p12 = scmp.ne.s32.totalorder %s1351_s28, 0 }
  0x95   : > { %s1223_s5 = sshll.u32 %s231_s7, 3 }
  0x96   : > { %s233_s22 = scalar_lea.vmem [#allocation9], %s1223_s5 }
  0x97   : > { %832 = dma.done.wait (%p1359_p12), %s221_s9, 128  }
  0x98   : > { %834 = vsyncadd (%p1359_p12), %s221_s9, 4294967168  ;;  %s1360_s16 = sld [smem:[#allocation17_spill]]  ;;  %s1361_s6 = sld [smem:[#allocation16_spill]] }
  0x9e   : > { %p262_p2 = scmp.eq.s32.totalorder %s1360_s16, 0  ;;  %p263_p1 = scmp.eq.s32.totalorder %s1361_s6, 0 }
  0xa0   : > { %p264_p13 = pnand %p263_p1, %p262_p2 }
  0xa1   : > { %vm268_vm0 = vcmask (!%p264_p13), 0   ;;  %v898_v0 = vmov (!%p264_p13), 0.0  }
  0xa2   : > { %267 = sbr.rel (%p264_p13) target bundleno = 169 (0xa9), region = 48  ;;  %269 = vst.msk [vmem:[#allocation10] sm:$0x1] (!%p264_p13), %vm268_vm0, %v898_v0 }
  0xa9 PF: > { %s1362_s11 = sld [smem:[#allocation16_spill]] }
  0xaf   : > { %p493_p3 = scmp.ne.s32.totalorder %s1362_s11, 0 }
  0xb0   : > { %vm273_vm1 = vcmask (!%p493_p3), 64512   ;;  %v899_v1 = vmov (!%p493_p3), 0.0  }
  0xb1   : > { %272 = sbr.rel (%p493_p3) target bundleno = 184 (0xb8), region = 52  ;;  %274 = vst.msk [vmem:[#allocation3] sm:$0xff] (!%p493_p3), %vm273_vm1, %v899_v1 }
  0xb8 PF: > { %v275_v2 = vld [vmem:[%s215_s15] sm:$0x3]  ;;  %v494_v3 = vld [vmem:[%s224_s4] ss:$0 sm:$0xff]  ;;  %v900_v4 = vmov 0.0   ;;  %vm901_vm2 = vmmov 0  }
  0xb9   : > { %503 = vmatprep.subr.bf16.mxu0 %v900_v4  ;;  %v276_v5 = vunpack.c.l.bf16 %v275_v2  ;;  %v285_v6 = vld [vmem:[%s215_s15] sm:$0xc]  ;;  %v495_v7 = vld [vmem:[%s224_s4 + $0x1] ss:$0 sm:$0xff]  ;;  %505 = vmatprep.mubr.msk.bf16.mxu0 %vm901_vm2, %v900_v4  ;;  %v296_v14 = vld [vmem:[#allocation3] sm:$0xff]  ;;  %vm338_vm3 = vcmask 64512  }
  0xba   : > { %v286_v8 = vunpack.c.l.bf16 %v285_v6  ;;  %s1363_s28 = sld [smem:[#allocation16_spill]] }
  0xbb   : > { %v282_v9 = vmul.f32 %v494_v3, %v276_v5 }
  0xbc   : > { %v292_v10 = vmul.f32 %v495_v7, %v286_v8 }
  0xbd   : > { %v283_v11 = vpack.c.bf16 %v282_v9, %v282_v9 }
  0xbe   : > { %v293_v12 = vpack.c.bf16 %v292_v10, %v292_v10 }
  0xbf   : > { %284 = vst [vmem:[#allocation2] sm:$0x3] %v283_v11 }
  0xc0   : > { %294 = vst [vmem:[#allocation2] sm:$0xc] %v293_v12  ;;  %p496_p6 = scmp.ne.s32.totalorder %s1363_s28, 1 }
  0xc1   : > { %v346_v21 = vld [vmem:[%s233_s22] sm:$0xff] (!%p496_p6)  ;;  %v348_v33 = vld [vmem:[#allocation10] sm:$0x1] (!%p496_p6)  ;;  %vm363_vm4 = vcmask (!%p496_p6), 0  }
  0xc7   : > { %v295_v13 = vld [vmem:[#allocation2] sm:$0xf] }
  0xc8   : > { %504 = vmatpush3.bf16.xpose.msra.mxu0 %v295_v13 }
  0xcf   : > { %506 = vmatmul.mubr.bf16.vlgmr.msra.gmra.mrb[0].mxu0 %v295_v13 }
 0x19f   : > { %343 = sbr.rel (%p496_p6) target bundleno = 646 (0x286), region = 56 }
 0x1a2   : > { %v331_v15 = vpop.f32.mrb[0].mxu0 }
 0x1a3   : > { %v337_v16 = vadd.f32 %v331_v15, %v296_v14  ;;  %v507_v17 = vpop.f32.mrb[1].mxu0 }
 0x1a4   : > { %v334_v18 = vpop.f32.mrb[2].mxu0 }
 0x1a5   : > { %339 = vst.msk [vmem:[#allocation3] sm:$0xff] %vm338_vm3, %v337_v16  ;;  %v508_v19 = vpop.f32.mrb[3].mxu0 }
 0x1ac   : > { %v344_v20 = vld [vmem:[#allocation3] sm:$0xff] }
 0x1ad   : > { %v345_v22 = vmul.f32 0.00048828125, %v344_v20 }
 0x1af   : > { %v347_v23 = vsub.f32 %v345_v22, %v346_v21 }
 0x1b1   : > { %v349_v24 = vmul.f32 %v347_v23, %v347_v23 }
 0x1b3   : > { %v350_v25 = vsel %vm338_vm3, %v349_v24, 0.0 }
 0x1b4   : > { %351 = vadd.xlane.f32.xlu0 %v350_v25 }
 0x241   : > { %v352_v26 = vpop.xlane.xlu0 %351 }
 0x242   : > { %v353_v27 = vrot.slane %v352_v26, 4 }
 0x244   : > { %v354_v28 = vadd.f32 %v353_v27, %v352_v26 }
 0x246   : > { %v355_v29 = vrot.slane %v354_v28, 2 }
 0x248   : > { %v356_v30 = vadd.f32 %v355_v29, %v354_v28 }
 0x24a   : > { %v357_v31 = vrot.slane %v356_v30, 1 }
 0x24c   : > { %v358_v32 = vadd.f32 %v357_v31, %v356_v30 }
 0x24e   : > { %509 = vpush %v358_v32 }
 0x27f   : > { %s510_s29 = spop %509 }
 0x280   : > { %s360_s1 = smul.f32 0.015625, %s510_s29 }
 0x282   : > { %v361_v34 = vstv %s360_s1 }
 0x283   : > { %v362_v35 = vadd.f32 %v361_v34, %v348_v33 }
 0x285   : > { %364 = vst.msk [vmem:[#allocation10] sm:$0x1] %vm363_vm4, %v362_v35 }
 0x286 PF: > { %p532_p7 = scmp.eq.s32.totalorder %s992_s26, 3  ;;  %s902_s15 = smov [#allocation10]  }
 0x287   : > { %s372_s12 = sshll.u32 %s902_s15, 4  ;;  %s373_s12 = int_to_ptr.vmem [resolvable:$true] %s372_s12 }
 0x288   : > { %s741_s18 = scalar_lea.vmem %s373_s12, 16  ;;  %s747_s3 = scalar_lea.vmem %s373_s12, 32 }
 0x289   : > { %p742_p4 = scmp.ne.s32.totalorder %s373_s12, %s741_s18  ;;  %p748_p9 = scmp.lt.s32.totalorder %s373_s12, %s373_s12 }
 0x28a   : > { %p749_p10 = scmp.lt.s32.totalorder %s747_s3, %s741_s18 }
 0x28b   : > { %p743_p5 = pnand %p742_p4, %p532_p7 }
 0x28c   : > { %p750_p0 = por %p749_p10, %p748_p9 }
 0x28d   : > { %p744_p8 = pneg %p743_p5 }
 0x28f   : > { %p751_p11 = pnand %p750_p0, %p744_p8 }
 0x291   : > { %754 = shalt.err (!%p751_p11)
}
 0x292   : > { %s1364_s9 = sld [smem:[#allocation22_spill]] }
 0x298   : > { %s755_s4 = scalar_lea.hbm %s1364_s9, 16 }
 0x299   : > { %p756_p12 = scmp.ne.s32.totalorder %s1364_s9, %s755_s4  ;;  %p761_p13 = scmp.lt.u32.totalorder %s755_s4, %s1364_s9 }
 0x29b   : > { %p757_p2 = pnand %p756_p12, %p532_p7 }
 0x29d   : > { %p758_p1 = pneg %p757_p2 }
 0x29f   : > { %p763_p3 = pnand %p761_p13, %p758_p1 }
 0x2a1   : > { %766 = shalt.err (!%p763_p3)
}
 0x2a2   : > { %518 = dma.vmem_to_hbm [thread:$0]  (%p532_p7), %s373_s12, 16, %s1364_s9, [#allocation6]  }
 0x2a3   : > { %836 = dma.done.wait (%p532_p7), [#allocation6], 16  }
 0x2a4   : > { %838 = vsyncadd (%p532_p7), [#allocation6], 4294967280 }
 0x2a5 PF: > { %s20_s25 = sadd.s32 1, %s893_s25   ;;  %s1366_s15 = sld [smem:[#allocation15_spill]] }
 0x2a6   : > { %p1264_p6 = scmp.ge.s32.totalorder %s20_s25, 6   ;;  %s1367_s26 = sld [smem:[#allocation18_spill]] }
 0x2a7   : > { %s1368_s29 = sld [smem:[#allocation19_spill]]  ;;  %s1369_s12 = smov %s845_s13 }
 0x2a8   : > { %s1370_s13 = smov %s849_s14  ;;  %s1371_s14 = smov %s1154_s27 }
 0x2a9   : > { %s1372_s16 = smov %s861_s17  ;;  %s1373_s17 = smov %s1035_s10 }
 0x2aa   : > { %s1374_s18 = smov %s869_s19  ;;  %s1375_s19 = smov %s873_s20 }
 0x2ab   : > { %s1376_s20 = smov %s1098_s21  ;;  %s1377_s21 = smov %s885_s23 }
 0x2ac   : > { %s1378_s22 = smov %s889_s24  ;;  %s1379_s23 = smov %s1367_s26 }
 0x2ad   : > { %s1380_s24 = smov %s1368_s29  ;;  %19 = sbr.rel (!%p1264_p6) target bundleno = 14 (0xe), region = 105 }
 0x2b4   :  { %385 = vsyncpa [#allocation5], 1 }
 0x2b5   :  { %387 = vsyncpa [#allocation5 + $0x1], 1 }
 0x2b6   :  { %388 = vsyncpa [#allocation8], 1 }
 0x2b7   :  { %390 = vsyncpa [#allocation8 + $0x1], 1 }
 0x2b8   :  { %391 = vsyncpa [#allocation6], 1 }
 0x2b9   :  { %393 = vsyncpa [#allocation6 + $0x1], 1 }

</bundles_post_ra>
